<compile_context>
chip_gen: v6e
topology: v6e:2x2x1
jax: 0.10.0
libtpu: 0.0.40
codegen_flags: <defaults>
</compile_context>

<pallas_src>
import math
from functools import partial

import jax
import jax.numpy as jnp
from jax import lax
from jax.experimental import pallas as pl
from jax.experimental.pallas import tpu as pltpu


def _round_up(x, m):
    return ((x + m - 1) // m) * m


def _arcface_kernel(labels_ref, phi_ref, logits_ref, out_ref, *, s, block_c):
    """out = where(col == label, phi_label, cosine) * s  (elementwise, lane-dense)."""
    j = pl.program_id(1)
    cosine = logits_ref[...]                         # (tb, tc) f32
    labels = labels_ref[...]                         # (tb, 1) int32
    phi = phi_ref[...]                               # (tb, 1) f32
    col = j * block_c + lax.broadcasted_iota(jnp.int32, cosine.shape, 1)
    out_ref[...] = jnp.where(col == labels, phi, cosine) * s


def arcface_adaptive_margin(logits, labels, margins, s=30.0, *,
                            block_b=None, block_c=None):
    """ArcFaceLossAdaptiveMargin.forward.

    logits : (B, C) float  (treated as cosines)
    labels : (B,) int
    margins: (C,) float    (per-class adaptive margins, indexed by label)
    """
    B, C = logits.shape
    cosine = logits.astype(jnp.float32)
    labels = labels.astype(jnp.int32)
    margins = margins.astype(jnp.float32)

    # ---- O(B) wrapper glue: phi is only used at the label column, compute it there ----
    ms = margins[labels]                                            # (B,)
    cos_m = jnp.cos(ms)
    sin_m = jnp.sin(ms)
    th = jnp.cos(math.pi - ms)
    mm = jnp.sin(math.pi - ms) * ms
    cos_lab = jnp.take_along_axis(cosine, labels[:, None], axis=1)[:, 0]   # (B,)
    sine_lab = jnp.sqrt(1.0 - cos_lab * cos_lab)        # no clamp, matches reference
    phi_lab = cos_lab * cos_m - sine_lab * sin_m
    phi_lab = jnp.where(cos_lab > th, phi_lab, cos_lab - mm)        # (B,)

    # ---- tile sizing: biggest lane-dense block with block bytes <= 4 MiB ----
    if block_b is None:
        block_b = min(_round_up(B, 8), 256)
    if block_c is None:
        max_block_bytes = 4 * 1024 * 1024
        cap = max(128, (max_block_bytes // (block_b * 4)) // 128 * 128)
        block_c = min(_round_up(C, 128), min(2048, cap))
    Bp = _round_up(B, block_b)
    Cp = _round_up(C, block_c)

    # ---- pad to tile multiples (padded labels = -1 never match any column) ----
    cosine_p = cosine
    if (Bp, Cp) != (B, C):
        cosine_p = jnp.pad(cosine, ((0, Bp - B), (0, Cp - C)))
    labels_p, phi_p = labels, phi_lab
    if Bp != B:
        labels_p = jnp.pad(labels, (0, Bp - B), constant_values=-1)
        phi_p = jnp.pad(phi_lab, (0, Bp - B))
    labels2d = labels_p.reshape(Bp, 1)
    phi2d = phi_p.reshape(Bp, 1)

    grid = (Bp // block_b, Cp // block_c)
    kernel = partial(_arcface_kernel, s=float(s), block_c=block_c)

    side_spec = pl.BlockSpec((block_b, 1), lambda i, j: (i, 0))
    out_p = pl.pallas_call(
        kernel,
        out_shape=jax.ShapeDtypeStruct((Bp, Cp), jnp.float32),
        grid_spec=pltpu.PrefetchScalarGridSpec(
            num_scalar_prefetch=0,
            grid=grid,
            in_specs=[
                side_spec,                                              # labels (tb,1)
                side_spec,                                              # phi_label (tb,1)
                pl.BlockSpec((block_b, block_c), lambda i, j: (i, j)),  # cosine tile
            ],
            out_specs=pl.BlockSpec((block_b, block_c), lambda i, j: (i, j)),
        ),
        input_output_aliases={2: 0},   # in-place over the (padded) logits buffer
        compiler_params=pltpu.CompilerParams(
            dimension_semantics=("parallel", "parallel"),
            vmem_limit_bytes=48 * 1024 * 1024),
    )(labels2d, phi2d, cosine_p)

    if (Bp, Cp) != (B, C):
        out_p = out_p[:B, :C]
    return out_p


def _reference(logits, labels, margins, s=30.0):
    """Pure-JAX reference mirroring the PyTorch module."""
    ms = margins[labels].astype(jnp.float32)
    cos_m = jnp.cos(ms)[:, None]
    sin_m = jnp.sin(ms)[:, None]
    th = jnp.cos(math.pi - ms)[:, None]
    mm = (jnp.sin(math.pi - ms) * ms)[:, None]
    onehot = jax.nn.one_hot(labels, logits.shape[1], dtype=jnp.float32)
    cosine = logits.astype(jnp.float32)
    sine = jnp.sqrt(1.0 - cosine ** 2)
    phi = cosine * cos_m - sine * sin_m
    phi = jnp.where(cosine > th, phi, cosine - mm)
    return (onehot * phi + (1.0 - onehot) * cosine) * s


if __name__ == "__main__":
    # Small, deliberately non-tile-aligned shapes to exercise the padding path.
    B, C = 10, 300
    s = 30.0

    key = jax.random.PRNGKey(0)
    k1, k2 = jax.random.split(key)

    # logits are cosine similarities in (-1, 1)
    logits = jnp.tanh(jax.random.normal(k1, (B, C), dtype=jnp.float32))
    labels = jax.random.randint(k2, (B,), 0, C, dtype=jnp.int32)
    margins = jnp.linspace(0.2, 0.5, C, dtype=jnp.float32)

    fn = jax.jit(lambda lg, lb, mg: arcface_adaptive_margin(lg, lb, mg, s=s))
    out = jax.block_until_ready(fn(logits, labels, margins))

    ref = _reference(logits, labels, margins, s=s)
    assert out.shape == (B, C) and out.dtype == jnp.float32
    assert jnp.allclose(out, ref, atol=1e-5, rtol=1e-5)

    print("KERNEL_OK")
</pallas_src>

<mosaic_0001>
module attributes {stable_mosaic.version = 11 : i64} {
  func.func @_arcface_kernel(%arg0: i32, %arg1: i32, %arg2: memref<16x1xi32, #tpu.memory_space<vmem>>, %arg3: memref<16x1xf32, #tpu.memory_space<vmem>>, %arg4: memref<16x384xf32, #tpu.memory_space<vmem>>, %arg5: memref<16x384xf32, #tpu.memory_space<vmem>>) attributes {dimension_semantics = [#tpu.dimension_semantics<parallel>, #tpu.dimension_semantics<parallel>], iteration_bounds = array<i64: 1, 1>, scalar_prefetch = 0 : i64, scratch_operands = 0 : i64, tpu.core_type = #tpu.core_type<tc>, window_params = [{transform_indices = @transform_0, window_bounds = array<i64: 16, 1>}, {transform_indices = @transform_1, window_bounds = array<i64: 16, 1>}, {transform_indices = @transform_2, window_bounds = array<i64: 16, 384>}, {transform_indices = @transform_3, window_bounds = array<i64: 16, 384>}]} {
    %c0 = arith.constant 0 : index
    %c0_0 = arith.constant 0 : index
    %0 = vector.load %arg4[%c0, %c0_0] : memref<16x384xf32, #tpu.memory_space<vmem>>, vector<16x384xf32>
    %c0_1 = arith.constant 0 : index
    %c0_2 = arith.constant 0 : index
    %1 = vector.load %arg2[%c0_1, %c0_2] : memref<16x1xi32, #tpu.memory_space<vmem>>, vector<16x1xi32>
    %c0_3 = arith.constant 0 : index
    %c0_4 = arith.constant 0 : index
    %2 = vector.load %arg3[%c0_3, %c0_4] : memref<16x1xf32, #tpu.memory_space<vmem>>, vector<16x1xf32>
    %c384_i32 = arith.constant 384 : i32
    %3 = arith.muli %arg1, %c384_i32 : i32
    %4 = tpu.iota {dimensions = array<i32: 1>} : vector<16x384xi32>
    %5 = vector.broadcast %3 : i32 to vector<16x384xi32>
    %6 = arith.addi %5, %4 : vector<16x384xi32>
    %7 = vector.broadcast %1 : vector<16x1xi32> to vector<16x384xi32>
    %8 = arith.cmpi eq, %6, %7 : vector<16x384xi32>
    %9 = vector.shape_cast %2 : vector<16x1xf32> to vector<16x1xf32>
    %10 = vector.broadcast %9 : vector<16x1xf32> to vector<16x384xf32>
    %11 = arith.select %8, %10, %0 : vector<16x384xi1>, vector<16x384xf32>
    %cst = arith.constant 3.000000e+01 : f32
    %12 = vector.broadcast %cst : f32 to vector<16x384xf32>
    %13 = arith.mulf %11, %12 : vector<16x384xf32>
    %c0_5 = arith.constant 0 : index
    %c0_6 = arith.constant 0 : index
    %14 = vector.load %arg5[%c0_5, %c0_6] : memref<16x384xf32, #tpu.memory_space<vmem>>, vector<16x384xf32>
    tpu.vector_store %arg5[%c0_5, %c0_6], %13 {strides = array<i32>} : memref<16x384xf32, #tpu.memory_space<vmem>>, vector<16x384xf32>,
    return
  }
  func.func @transform_0(%arg0: i32, %arg1: i32) -> (i32, i32) {
    %c0_i32 = arith.constant 0 : i32
    %c0_i32_0 = arith.constant 0 : i32
    return %arg0, %c0_i32 : i32, i32
  }
  func.func @transform_1(%arg0: i32, %arg1: i32) -> (i32, i32) {
    %c0_i32 = arith.constant 0 : i32
    %c0_i32_0 = arith.constant 0 : i32
    return %arg0, %c0_i32 : i32, i32
  }
  func.func @transform_2(%arg0: i32, %arg1: i32) -> (i32, i32) {
    %c0_i32 = arith.constant 0 : i32
    return %arg0, %arg1 : i32, i32
  }
  func.func @transform_3(%arg0: i32, %arg1: i32) -> (i32, i32) {
    %c0_i32 = arith.constant 0 : i32
    return %arg0, %arg1 : i32, i32
  }
}

</mosaic_0001>

<bundles_post_ra>
// kernel: _lambda_.1
= control target key start
LH: loop header
LB: loop body
LE: loop exit
PB: predicated region body
PF: predicated region fallthrough
CT: control target
= control target key end

     0   :  { %v80_v0 = vmov 0   ;;  %v25_v5 = vlaneseq  ;;  %s149_s1 = inlined_call_operand.vmem [shape: f32[16,1], index: 1, kind: input, shape index: {}]   ;;  %s150_s0 = inlined_call_operand.vmem [shape: s32[16,1], index: 0, kind: input, shape index: {}]   ;;  %s151_s2 = inlined_call_operand.vmem [shape: f32[16,384], index: 2, kind: input, shape index: {}, may-alias: {2,3}]   ;;  %s152_s3 = inlined_call_operand.vmem [shape: f32[16,384], index: 3, kind: output, shape index: {}, may-alias: {2,3}]  }
   0x1   :  { %79 = vset.pattern.permute.xlu1 %v80_v0  ;;  %78 = vset.pattern.permute.xlu0 %v80_v0  ;;  %v22_v1 = vld [vmem:[%s149_s1] sm:$0xff]  ;;  %v23_v3 = vld [vmem:[%s149_s1 + $0x8] sm:$0xff]  ;;  %v16_v11 = vld [vmem:[%s151_s2 + $0x10] sm:$0xff] }
   0x2   :  { %v20_v2 = vld [vmem:[%s150_s0] sm:$0xff]  ;;  %47 = vperm.xlu1 %79, %v22_v1   ;;  %v21_v4 = vld [vmem:[%s150_s0 + $0x8] sm:$0xff]  ;;  %v26_v6 = vand.u32 127, %v25_v5  ;;  %v17_v20 = vld [vmem:[%s151_s2 + $0x18] sm:$0xff] }
   0x3   :  { %34 = vperm.xlu0 %78, %v20_v2   ;;  %v14_v9 = vld [vmem:[%s151_s2] sm:$0xff]  ;;  %v15_v10 = vld [vmem:[%s151_s2 + $0x8] sm:$0xff] }
   0x4   :  { %v27_v7 = vadd.s32 128, %v26_v6  ;;  %v28_v8 = vadd.s32 256, %v26_v6  ;;  %v18_v21 = vld [vmem:[%s151_s2 + $0x20] sm:$0xff]  ;;  %v19_v22 = vld [vmem:[%s151_s2 + $0x28] sm:$0xff] }
   0x6   :  { %52 = vperm.xlu1 %79, %v23_v3  }
   0x7   :  { %37 = vperm.xlu0 %78, %v21_v4  }
  0x7d   :  { %v48_v12 = vpop.permute.xlu1 %47 }
  0x7e   :  { %v35_v13 = vpop.permute.xlu0 %34 }
  0x7f   :  { %vm39_vm0 = vcmp.eq.s32.totalorder %v26_v6, %v35_v13  ;;  %vm40_vm1 = vcmp.eq.s32.totalorder %v27_v7, %v35_v13  ;;  %vm41_vm2 = vcmp.eq.s32.totalorder %v28_v8, %v35_v13 }
  0x80   :  { %v55_v14 = vsel %vm39_vm0, %v48_v12, %v14_v9  ;;  %v56_v15 = vsel %vm40_vm1, %v48_v12, %v15_v10  ;;  %v57_v16 = vsel %vm41_vm2, %v48_v12, %v16_v11 }
  0x81   :  { %v61_v17 = vmul.f32 30.0, %v55_v14  ;;  %v62_v18 = vmul.f32 30.0, %v56_v15  ;;  %v63_v19 = vmul.f32 30.0, %v57_v16  ;;  %v53_v23 = vpop.permute.xlu1 %52 }
  0x82   :  { %v38_v24 = vpop.permute.xlu0 %37 }
  0x83   :  { %67 = vst [vmem:[%s152_s3] sm:$0xff] %v61_v17  ;;  %68 = vst [vmem:[%s152_s3 + $0x8] sm:$0xff] %v62_v18  ;;  %vm42_vm3 = vcmp.eq.s32.totalorder %v26_v6, %v38_v24  ;;  %vm43_vm4 = vcmp.eq.s32.totalorder %v27_v7, %v38_v24  ;;  %vm44_vm5 = vcmp.eq.s32.totalorder %v28_v8, %v38_v24 }
  0x84   :  { %69 = vst [vmem:[%s152_s3 + $0x10] sm:$0xff] %v63_v19  ;;  %v58_v25 = vsel %vm42_vm3, %v53_v23, %v17_v20  ;;  %v59_v26 = vsel %vm43_vm4, %v53_v23, %v18_v21  ;;  %v60_v27 = vsel %vm44_vm5, %v53_v23, %v19_v22 }
  0x85   :  { %v64_v28 = vmul.f32 30.0, %v58_v25  ;;  %v65_v29 = vmul.f32 30.0, %v59_v26  ;;  %v66_v30 = vmul.f32 30.0, %v60_v27 }
  0x87   :  { %70 = vst [vmem:[%s152_s3 + $0x18] sm:$0xff] %v64_v28  ;;  %71 = vst [vmem:[%s152_s3 + $0x20] sm:$0xff] %v65_v29 }
  0x88   :  { %72 = vst [vmem:[%s152_s3 + $0x28] sm:$0xff] %v66_v30 }

</bundles_post_ra>
